<compile_context>
chip_gen: v7x
topology: tpu7x:2x2x1
jax: 0.10.0
libtpu: 0.0.40
codegen_flags: <defaults>
</compile_context>

<pallas_src>
import functools

import jax
import jax.numpy as jnp
from jax.experimental import pallas as pl
from jax.experimental.pallas import tpu as pltpu

LAYER_SIZE = 100   # hard-coded in the PyTorch module
HP = 128           # padded hidden width (LAYER_SIZE -> 128 lanes)
MAX_TM = 512       # max batch-tile rows


def _round_up(x, m):
    return ((x + m - 1) // m) * m


def dueling_kernel(x_ref, w1_ref, b1_ref, wav_ref, bav_ref, wh_ref, bh_ref,
                   q_ref, *, num_actions, batch_real, fuse_mean):
    cdt = w1_ref.dtype
    x = x_ref[...].astype(cdt)

    # head_1 + relu                                             [tm, 128]
    h = jnp.dot(x, w1_ref[...], preferred_element_type=jnp.float32) + b1_ref[...]
    h = jnp.maximum(h, 0.0)

    # fused layerA || layerV + relu                             [tm, 256]
    hav = jnp.dot(h.astype(cdt), wav_ref[...],
                  preferred_element_type=jnp.float32) + bav_ref[...]
    hav = jnp.maximum(hav, 0.0)

    # fused advantage/value head                                [tm, 128]
    #   cols [0:A)  = adv_j + value   (Q before mean subtraction)
    #   cols [A:2A) = adv_j           (for the global mean)
    head = jnp.dot(hav.astype(cdt), wh_ref[...],
                   preferred_element_type=jnp.float32) + bh_ref[...]

    if fuse_mean:
        # Single-tile fast path: whole batch lives in this tile, so compute
        # the GLOBAL advantage mean here and write the final Q directly.
        # Padded batch rows (zeros in x still propagate relu(b1) junk) and
        # all non-advantage columns are excluded by the mask.
        tile_m, width = head.shape
        row = jax.lax.broadcasted_iota(jnp.int32, (tile_m, width), 0)
        col = jax.lax.broadcasted_iota(jnp.int32, (tile_m, width), 1)
        mask = (row < batch_real) & (col >= num_actions) & (col < 2 * num_actions)
        adv_sum = jnp.sum(jnp.where(mask, head, 0.0))
        mean = adv_sum * (1.0 / (batch_real * num_actions))
        q_ref[...] = (head - mean).astype(q_ref.dtype)
    else:
        # Multi-tile path: just store the slab (lane-dense, unmasked vst);
        # the wrapper takes the mean from the stored advantage columns.
        q_ref[...] = head.astype(q_ref.dtype)


@functools.partial(jax.jit, static_argnames=("output_dimension",))
def dueling_forward(x, packed, output_dimension):
    """Runs the fused Pallas kernel. `packed` comes from pack_params()."""
    b, d = x.shape
    a = output_dimension
    hp = packed["w1"].shape[1]          # padded hidden width (128)
    qp = packed["wh"].shape[1]          # padded head width   (>=128)
    out_dtype = jnp.float32             # keep f32 Q slab for exact parity
                                        # (bf16 is fine for RL use on v6e/v7x)

    # Pad the batch only to a multiple of 8 (sublane granularity); ragged
    # last tile handles the rest.
    bp = _round_up(b, 8)
    xp = x if bp == b else jnp.zeros((bp, d), x.dtype).at[:b].set(x)

    tm = min(MAX_TM, bp)
    grid_size = pl.cdiv(bp, tm)
    fuse_mean = grid_size == 1          # static under jit

    kernel = functools.partial(dueling_kernel, num_actions=a, batch_real=b,
                               fuse_mean=fuse_mean)

    # Real (unpadded) traffic / flops so XLA schedules/overlaps this tiny
    # kernel sensibly.
    flops = 2 * b * (d * hp + hp * (2 * hp) + (2 * hp) * qp)
    bytes_accessed = (
        b * d * x.dtype.itemsize
        + sum(int(v.size) * v.dtype.itemsize for v in packed.values())
        + b * qp * jnp.dtype(out_dtype).itemsize)

    q_pad = pl.pallas_call(
        kernel,
        out_shape=jax.ShapeDtypeStruct((bp, qp), out_dtype),
        grid=(grid_size,),
        in_specs=[
            pl.BlockSpec((tm, d), lambda i: (i, 0)),         # x tile (real width)
            pl.BlockSpec((d, hp), lambda i: (0, 0)),         # W1   (resident)
            pl.BlockSpec((1, hp), lambda i: (0, 0)),         # b1
            pl.BlockSpec((hp, 2 * hp), lambda i: (0, 0)),    # W_AV (resident)
            pl.BlockSpec((1, 2 * hp), lambda i: (0, 0)),     # b_AV
            pl.BlockSpec((2 * hp, qp), lambda i: (0, 0)),    # W_head (resident)
            pl.BlockSpec((1, qp), lambda i: (0, 0)),         # b_head
        ],
        out_specs=pl.BlockSpec((tm, qp), lambda i: (i, 0)),  # Q slab
        # No cross-tile accumulator -> batch axis is truly parallel (lets v7x
        # shard the grid across its 2 TensorCores; neutral on v5e/v6e).
        compiler_params=pltpu.CompilerParams(
            dimension_semantics=("parallel",)),
        cost_estimate=pl.CostEstimate(flops=flops, transcendentals=0,
                                      bytes_accessed=bytes_accessed),
    )(xp, packed["w1"], packed["b1"], packed["wav"], packed["bav"],
      packed["wh"], packed["bh"])

    if fuse_mean:
        # Mean already subtracted in-kernel; just slice the real Q block.
        return q_pad[:b, :a]
    # Multi-tile: global scalar mean over the REAL rows of the pure-advantage
    # columns, then Q = (value + advantage) - mean.
    mean = jnp.mean(q_pad[:b, a:2 * a])
    return q_pad[:b, :a] - mean


def pack_params(params, input_dimension, output_dimension, dtype=jnp.float32):
    """Pad hidden/head dims to 128 lanes and fuse the A/V and adv/value heads.

    Use dtype=jnp.bfloat16 on v6e/v7x for the bf16-compute / f32-accumulate
    path; keep float32 on v5e (no bf16 VPU path) or for exact validation.
    """
    h = LAYER_SIZE
    a = output_dimension
    d = input_dimension
    qp = _round_up(max(2 * a, 128), 128)

    # W1 keeps its real input width d (no feature-dim padding of x needed).
    w1p = jnp.zeros((d, HP), jnp.float32).at[:, :h].set(params["w1"])
    b1p = jnp.zeros((1, HP), jnp.float32).at[:, :h].set(params["b1"])

    wavp = jnp.zeros((HP, 2 * HP), jnp.float32)
    wavp = wavp.at[:h, :h].set(params["wA"]).at[:h, HP:HP + h].set(params["wV"])
    bavp = jnp.zeros((1, 2 * HP), jnp.float32)
    bavp = bavp.at[:, :h].set(params["bA"]).at[:, HP:HP + h].set(params["bV"])

    whp = jnp.zeros((2 * HP, qp), jnp.float32)
    # cols [0:A): advantage_j (from xA rows) + value (from xV rows)
    whp = whp.at[:h, :a].set(params["wAdv"])
    whp = whp.at[HP:HP + h, :a].set(jnp.broadcast_to(params["wVal"], (h, a)))
    # cols [A:2A): pure advantage_j (for the global mean)
    whp = whp.at[:h, a:2 * a].set(params["wAdv"])
    bhp = jnp.zeros((1, qp), jnp.float32)
    bhp = bhp.at[:, :a].set(params["bAdv"] + params["bVal"])
    bhp = bhp.at[:, a:2 * a].set(params["bAdv"])

    packed = dict(w1=w1p, b1=b1p, wav=wavp, bav=bavp, wh=whp, bh=bhp)
    return {k: v.astype(dtype) for k, v in packed.items()}


def init_params(key, input_dimension, output_dimension):
    """Deterministic synthetic init (PyTorch-Linear-like uniform fan-in)."""
    def linear(k, fan_in, fan_out):
        k_w, k_b = jax.random.split(k)
        bound = 1.0 / jnp.sqrt(float(fan_in))
        # stored as [in, out] (transpose of torch's [out, in])
        w = jax.random.uniform(k_w, (fan_in, fan_out), jnp.float32, -bound, bound)
        b = jax.random.uniform(k_b, (1, fan_out), jnp.float32, -bound, bound)
        return w, b

    k1, k2, k3, k4, k5 = jax.random.split(key, 5)
    w1, b1 = linear(k1, input_dimension, LAYER_SIZE)
    wA, bA = linear(k2, LAYER_SIZE, LAYER_SIZE)
    wV, bV = linear(k3, LAYER_SIZE, LAYER_SIZE)
    wAdv, bAdv = linear(k4, LAYER_SIZE, output_dimension)
    wVal, bVal = linear(k5, LAYER_SIZE, 1)
    return dict(w1=w1, b1=b1, wA=wA, bA=bA, wV=wV, bV=bV,
                wAdv=wAdv, bAdv=bAdv, wVal=wVal, bVal=bVal)


def reference_forward(x, params, output_dimension):
    """Pure-JAX reference mirroring the PyTorch forward."""
    h = jax.nn.relu(x @ params["w1"] + params["b1"])
    xa = jax.nn.relu(h @ params["wA"] + params["bA"])
    xv = jax.nn.relu(h @ params["wV"] + params["bV"])
    value = xv @ params["wVal"] + params["bVal"]          # [B, 1]
    adv = xa @ params["wAdv"] + params["bAdv"]            # [B, A]
    value = jnp.broadcast_to(value, (x.shape[0], output_dimension))
    return value + adv - jnp.mean(adv)


if __name__ == "__main__":
    input_dimension = 16
    output_dimension = 4

    key = jax.random.PRNGKey(0)
    k_x, k_p, k_x2, k_x3 = jax.random.split(key, 4)
    params = init_params(k_p, input_dimension, output_dimension)
    packed = pack_params(params, input_dimension, output_dimension)  # f32; bf16 on v6e/v7x

    # Small batch: single tile, padded batch rows, fused in-kernel mean.
    batch = 4
    x = jax.random.normal(k_x, (batch, input_dimension), jnp.float32)
    q = jax.block_until_ready(dueling_forward(x, packed, output_dimension))
    q_ref = reference_forward(x, params, output_dimension)
    assert q.shape == (batch, output_dimension)
    assert jnp.allclose(q, q_ref, atol=1e-4, rtol=1e-4), (q, q_ref)

    # Moderate batch: still one tile (tm=304), fused in-kernel mean.
    batch2 = 300
    x2 = jax.random.normal(k_x2, (batch2, input_dimension), jnp.float32)
    q2 = jax.block_until_ready(dueling_forward(x2, packed, output_dimension))
    q2_ref = reference_forward(x2, params, output_dimension)
    assert q2.shape == (batch2, output_dimension)
    assert jnp.allclose(q2, q2_ref, atol=1e-4, rtol=1e-4)

    # Larger batch: exercises the multi-tile parallel grid with a ragged last
    # tile and the wrapper-side global mean.
    batch3 = 700
    x3 = jax.random.normal(k_x3, (batch3, input_dimension), jnp.float32)
    q3 = jax.block_until_ready(dueling_forward(x3, packed, output_dimension))
    q3_ref = reference_forward(x3, params, output_dimension)
    assert q3.shape == (batch3, output_dimension)
    assert jnp.allclose(q3, q3_ref, atol=1e-4, rtol=1e-4)

    print("KERNEL_OK")
</pallas_src>

<mosaic_0001>
module attributes {stable_mosaic.version = 11 : i64} {
  func.func @dueling_kernel(%arg0: i32, %arg1: memref<8x16xf32, #tpu.memory_space<vmem>>, %arg2: memref<16x128xf32, #tpu.memory_space<vmem>>, %arg3: memref<1x128xf32, #tpu.memory_space<vmem>>, %arg4: memref<128x256xf32, #tpu.memory_space<vmem>>, %arg5: memref<1x256xf32, #tpu.memory_space<vmem>>, %arg6: memref<256x128xf32, #tpu.memory_space<vmem>>, %arg7: memref<1x128xf32, #tpu.memory_space<vmem>>, %arg8: memref<8x128xf32, #tpu.memory_space<vmem>>) attributes {dimension_semantics = [#tpu.dimension_semantics<parallel>], iteration_bounds = array<i64: 1>, scalar_prefetch = 0 : i64, scratch_operands = 0 : i64, tpu.core_type = #tpu.core_type<tc>, window_params = [{transform_indices = @transform_0, window_bounds = array<i64: 8, 16>}, {pipeline_mode = #tpu.pipeline_mode<synchronous>, transform_indices = @transform_1, window_bounds = array<i64: 16, 128>}, {pipeline_mode = #tpu.pipeline_mode<synchronous>, transform_indices = @transform_2, window_bounds = array<i64: 1, 128>}, {pipeline_mode = #tpu.pipeline_mode<synchronous>, transform_indices = @transform_3, window_bounds = array<i64: 128, 256>}, {pipeline_mode = #tpu.pipeline_mode<synchronous>, transform_indices = @transform_4, window_bounds = array<i64: 1, 256>}, {pipeline_mode = #tpu.pipeline_mode<synchronous>, transform_indices = @transform_5, window_bounds = array<i64: 256, 128>}, {pipeline_mode = #tpu.pipeline_mode<synchronous>, transform_indices = @transform_6, window_bounds = array<i64: 1, 128>}, {transform_indices = @transform_7, window_bounds = array<i64: 8, 128>}]} {
    %c0 = arith.constant 0 : index
    %c0_0 = arith.constant 0 : index
    %0 = vector.load %arg1[%c0, %c0_0] : memref<8x16xf32, #tpu.memory_space<vmem>>, vector<8x16xf32>
    %c0_1 = arith.constant 0 : index
    %c0_2 = arith.constant 0 : index
    %1 = vector.load %arg2[%c0_1, %c0_2] : memref<16x128xf32, #tpu.memory_space<vmem>>, vector<16x128xf32>
    %cst = arith.constant dense<0.000000e+00> : vector<8x128xf32>
    %2 = tpu.matmul %0, %1, %cst {dimension_numbers = #tpu.dot_dimension_numbers<[1], [0], [0], [1], [0, 0, 1, 1], [], []>} : vector<8x16xf32>, vector<16x128xf32>, vector<8x128xf32> -> vector<8x128xf32>
    %c0_3 = arith.constant 0 : index
    %c0_4 = arith.constant 0 : index
    %3 = vector.load %arg3[%c0_3, %c0_4] : memref<1x128xf32, #tpu.memory_space<vmem>>, vector<1x128xf32>
    %4 = vector.broadcast %3 : vector<1x128xf32> to vector<8x128xf32>
    %5 = arith.addf %2, %4 : vector<8x128xf32>
    %cst_5 = arith.constant 0.000000e+00 : f32
    %6 = vector.broadcast %cst_5 : f32 to vector<8x128xf32>
    %7 = arith.maximumf %5, %6 : vector<8x128xf32>
    %c0_6 = arith.constant 0 : index
    %c0_7 = arith.constant 0 : index
    %8 = vector.load %arg4[%c0_6, %c0_7] : memref<128x256xf32, #tpu.memory_space<vmem>>, vector<128x256xf32>
    %cst_8 = arith.constant dense<0.000000e+00> : vector<8x256xf32>
    %9 = tpu.matmul %7, %8, %cst_8 {dimension_numbers = #tpu.dot_dimension_numbers<[1], [0], [0], [1], [0, 0, 1, 1], [], []>} : vector<8x128xf32>, vector<128x256xf32>, vector<8x256xf32> -> vector<8x256xf32>
    %c0_9 = arith.constant 0 : index
    %c0_10 = arith.constant 0 : index
    %10 = vector.load %arg5[%c0_9, %c0_10] : memref<1x256xf32, #tpu.memory_space<vmem>>, vector<1x256xf32>
    %11 = vector.broadcast %10 : vector<1x256xf32> to vector<8x256xf32>
    %12 = arith.addf %9, %11 : vector<8x256xf32>
    %cst_11 = arith.constant 0.000000e+00 : f32
    %13 = vector.broadcast %cst_11 : f32 to vector<8x256xf32>
    %14 = arith.maximumf %12, %13 : vector<8x256xf32>
    %c0_12 = arith.constant 0 : index
    %c0_13 = arith.constant 0 : index
    %15 = vector.load %arg6[%c0_12, %c0_13] : memref<256x128xf32, #tpu.memory_space<vmem>>, vector<256x128xf32>
    %cst_14 = arith.constant dense<0.000000e+00> : vector<8x128xf32>
    %16 = tpu.matmul %14, %15, %cst_14 {dimension_numbers = #tpu.dot_dimension_numbers<[1], [0], [0], [1], [0, 0, 1, 1], [], []>} : vector<8x256xf32>, vector<256x128xf32>, vector<8x128xf32> -> vector<8x128xf32>
    %c0_15 = arith.constant 0 : index
    %c0_16 = arith.constant 0 : index
    %17 = vector.load %arg7[%c0_15, %c0_16] : memref<1x128xf32, #tpu.memory_space<vmem>>, vector<1x128xf32>
    %18 = vector.broadcast %17 : vector<1x128xf32> to vector<8x128xf32>
    %19 = arith.addf %16, %18 : vector<8x128xf32>
    %20 = tpu.iota {dimensions = array<i32: 0>} : vector<8x128xi32>
    %21 = tpu.iota {dimensions = array<i32: 1>} : vector<8x128xi32>
    %c4_i32 = arith.constant 4 : i32
    %22 = vector.broadcast %c4_i32 : i32 to vector<8x128xi32>
    %23 = arith.cmpi slt, %20, %22 : vector<8x128xi32>
    %c4_i32_17 = arith.constant 4 : i32
    %24 = vector.broadcast %c4_i32_17 : i32 to vector<8x128xi32>
    %25 = arith.cmpi sge, %21, %24 : vector<8x128xi32>
    %26 = arith.andi %23, %25 : vector<8x128xi1>
    %c8_i32 = arith.constant 8 : i32
    %27 = vector.broadcast %c8_i32 : i32 to vector<8x128xi32>
    %28 = arith.cmpi slt, %21, %27 : vector<8x128xi32>
    %29 = arith.andi %26, %28 : vector<8x128xi1>
    %cst_18 = arith.constant 0.000000e+00 : f32
    %30 = vector.broadcast %cst_18 : f32 to vector<8x128xf32>
    %31 = arith.select %29, %19, %30 : vector<8x128xi1>, vector<8x128xf32>
    %32 = vector.shape_cast %31 : vector<8x128xf32> to vector<1x8x128xf32>
    %cst_19 = arith.constant dense<0.000000e+00> : vector<1xf32>
    %33 = vector.multi_reduction <add>, %32, %cst_19 [1, 2] : vector<1x8x128xf32> to vector<1xf32>
    %34 = vector.shape_cast %33 : vector<1xf32> to vector<1x1x1xf32>
    %35 = vector.extract %34[0, 0, 0] : f32 from vector<1x1x1xf32>
    %cst_20 = arith.constant 6.250000e-02 : f32
    %36 = arith.mulf %35, %cst_20 : f32
    %37 = vector.broadcast %36 : f32 to vector<8x128xf32>
    %38 = arith.subf %19, %37 : vector<8x128xf32>
    %c0_21 = arith.constant 0 : index
    %c0_22 = arith.constant 0 : index
    %39 = vector.load %arg8[%c0_21, %c0_22] : memref<8x128xf32, #tpu.memory_space<vmem>>, vector<8x128xf32>
    tpu.vector_store %arg8[%c0_21, %c0_22], %38 {strides = array<i32>} : memref<8x128xf32, #tpu.memory_space<vmem>>, vector<8x128xf32>,
    return
  }
  func.func @transform_0(%arg0: i32) -> (i32, i32) {
    %c0_i32 = arith.constant 0 : i32
    %c0_i32_0 = arith.constant 0 : i32
    return %arg0, %c0_i32 : i32, i32
  }
  func.func @transform_1(%arg0: i32) -> (i32, i32) {
    %c0_i32 = arith.constant 0 : i32
    %c0_i32_0 = arith.constant 0 : i32
    %c0_i32_1 = arith.constant 0 : i32
    return %c0_i32, %c0_i32_0 : i32, i32
  }
  func.func @transform_2(%arg0: i32) -> (i32, i32) {
    %c0_i32 = arith.constant 0 : i32
    %c0_i32_0 = arith.constant 0 : i32
    %c0_i32_1 = arith.constant 0 : i32
    return %c0_i32, %c0_i32_0 : i32, i32
  }
  func.func @transform_3(%arg0: i32) -> (i32, i32) {
    %c0_i32 = arith.constant 0 : i32
    %c0_i32_0 = arith.constant 0 : i32
    %c0_i32_1 = arith.constant 0 : i32
    return %c0_i32, %c0_i32_0 : i32, i32
  }
  func.func @transform_4(%arg0: i32) -> (i32, i32) {
    %c0_i32 = arith.constant 0 : i32
    %c0_i32_0 = arith.constant 0 : i32
    %c0_i32_1 = arith.constant 0 : i32
    return %c0_i32, %c0_i32_0 : i32, i32
  }
  func.func @transform_5(%arg0: i32) -> (i32, i32) {
    %c0_i32 = arith.constant 0 : i32
    %c0_i32_0 = arith.constant 0 : i32
    %c0_i32_1 = arith.constant 0 : i32
    return %c0_i32, %c0_i32_0 : i32, i32
  }
  func.func @transform_6(%arg0: i32) -> (i32, i32) {
    %c0_i32 = arith.constant 0 : i32
    %c0_i32_0 = arith.constant 0 : i32
    %c0_i32_1 = arith.constant 0 : i32
    return %c0_i32, %c0_i32_0 : i32, i32
  }
  func.func @transform_7(%arg0: i32) -> (i32, i32) {
    %c0_i32 = arith.constant 0 : i32
    %c0_i32_0 = arith.constant 0 : i32
    return %arg0, %c0_i32 : i32, i32
  }
}

</mosaic_0001>

<bundles_post_ra>
// kernel: dueling_forward.1
= control target key start
LH: loop header
LB: loop body
LE: loop exit
PB: predicated region body
PF: predicated region fallthrough
CT: control target
= control target key end

     0   :  { %12 = vsyncpa [#allocation3], 0  ;;  %s662_s0 = inlined_call_operand.vmem [shape: f32[8,16], index: 0, kind: input, shape index: {}]   ;;  %s663_s1 = inlined_call_operand.vmem [shape: f32[16,128], index: 1, kind: input, shape index: {}]   ;;  %s664_s2 = inlined_call_operand.vmem [shape: f32[1,128], index: 2, kind: input, shape index: {}]   ;;  %s665_s3 = inlined_call_operand.hbm [shape: f32[128,256], index: 3, kind: input, shape index: {}]   ;;  %s666_s4 = inlined_call_operand.vmem [shape: f32[1,256], index: 4, kind: input, shape index: {}]   ;;  %s667_s5 = inlined_call_operand.hbm [shape: f32[256,128], index: 5, kind: input, shape index: {}]   ;;  %s668_s6 = inlined_call_operand.vmem [shape: f32[1,128], index: 6, kind: input, shape index: {}]   ;;  %s669_s7 = inlined_call_operand.vmem [shape: f32[8,128], index: 7, kind: output, shape index: {}]  }
   0x1   :  { %13 = vsyncpa [#allocation5], 0  ;;  %s568_s24 = smov [#allocation2]   ;;  %s520_s28 = scalar_lea.hbm %s665_s3, 4096 }
   0x2   :  { %s25_s25 = sshll.u32 %s568_s24, 4  ;;  %p521_p0 = scmp.ne.s32.totalorder %s665_s3, %s520_s28  ;;  %s26_s25 = int_to_ptr.vmem [resolvable:$true] %s25_s25 }
   0x3   :  { %p524_p1 = scmp.lt.u32.totalorder %s520_s28, %s665_s3 }
   0x5   :  { %p526_p2 = pnand %p524_p1, %p521_p0 }
   0x7   :  { %529 = shalt.err (!%p526_p2)
}
   0x8   :  { %s530_s10 = scalar_lea.vmem %s26_s25, 4096  ;;  %p535_p4 = scmp.lt.s32.totalorder %s26_s25, %s26_s25 }
   0x9   :  { %p531_p3 = scmp.ne.s32.totalorder %s26_s25, %s530_s10  ;;  %p536_p5 = scmp.lt.s32.totalorder %s530_s10, %s530_s10 }
   0xb   :  { %p537_p6 = por %p536_p5, %p535_p4 }
   0xd   :  { %p538_p7 = pnand %p537_p6, %p531_p3 }
   0xf   :  { %541 = shalt.err (!%p538_p7)
}
  0x10   :  { %s569_s11 = smov 256   ;;  %s570_s12 = smov 16  }
  0x11   :  { %31 = dma.hbm_to_vmem [thread:$0]  %s665_s3, 4096, %s26_s25, [#allocation3], %s569_s11, %s569_s11, %s570_s12  }
  0x12   :  { %s571_s15 = smov [#allocation4]   ;;  %s542_s19 = scalar_lea.hbm %s667_s5, 4096 }
  0x13   :  { %s39_s16 = sshll.u32 %s571_s15, 4  ;;  %p543_p8 = scmp.ne.s32.totalorder %s667_s5, %s542_s19  ;;  %s40_s16 = int_to_ptr.vmem [resolvable:$true] %s39_s16 }
  0x14   :  { %p546_p9 = scmp.lt.u32.totalorder %s542_s19, %s667_s5 }
  0x16   :  { %p548_p10 = pnand %p546_p9, %p543_p8 }
  0x18   :  { %551 = shalt.err (!%p548_p10)
}
  0x19   :  { %s552_s24 = scalar_lea.vmem %s40_s16, 4096  ;;  %p557_p12 = scmp.lt.s32.totalorder %s40_s16, %s40_s16 }
  0x1a   :  { %p553_p11 = scmp.ne.s32.totalorder %s40_s16, %s552_s24  ;;  %p558_p13 = scmp.lt.s32.totalorder %s552_s24, %s552_s24 }
  0x1c   :  { %p559_p0 = por %p558_p13, %p557_p12 }
  0x1e   :  { %p560_p1 = pnand %p559_p0, %p553_p11 }
  0x20   :  { %563 = shalt.err (!%p560_p1)
}
  0x21   :  { %s572_s3 = smov 128   ;;  %s573_s25 = smov 8  }
  0x22   :  { %45 = dma.hbm_to_vmem [thread:$0]  %s667_s5, 4096, %s40_s16, [#allocation5], %s572_s3, %s572_s3, %s573_s25  }
  0x23   :  { %564 = dma.done.wait [#allocation3], 4096  }
  0x24   :  { %565 = vsyncadd [#allocation3], 4294963200 }
  0x25   :  { %566 = dma.done.wait [#allocation5], 4096  }
  0x26   :  { %567 = vsyncadd [#allocation5], 4294963200  ;;  %v574_v0 = vmov 0.0|0.0   ;;  %vm575_vm0 = vmmov 0   ;;  %v576_v1 = vmov 0.0   ;;  %v55_v2 = vld [vmem:[%s663_s1] sm:$0xff] }
  0x27   :  { %442 = vmatprep.subr.bf16.mxu0 %v574_v0  ;;  %439 = vmatprep.mubr.msk.f32.mxu0 %vm575_vm0, %v576_v1  ;;  %v56_v3 = vld [vmem:[%s663_s1 + $0x8] sm:$0xff]  ;;  %v54_v5 = vld [vmem:[%s662_s0] sm:$0xff]  ;;  %v140_v6 = vld [vmem:[#allocation2 + $0x8] sm:$0xff]  ;;  %vm64_vm1 = vcmask 130048  }
  0x28   :  { %247 = vmatprep.mubr.f32.mxu1 %v576_v1  ;;  %v443_v4 = vpack.c.bf16 %v56_v3, %v55_v2  ;;  %v142_v7 = vld [vmem:[#allocation2 + $0x18] sm:$0xff]  ;;  %v139_v8 = vld [vmem:[#allocation2] sm:$0xff]  ;;  %v141_v10 = vld [vmem:[#allocation2 + $0x10] sm:$0xff] }
  0x29   :  { %v445_v9 = vpack.c.bf16 %v142_v7, %v140_v6  ;;  %v144_v11 = vld [vmem:[#allocation2 + $0x28] sm:$0xff]  ;;  %v146_v12 = vld [vmem:[#allocation2 + $0x38] sm:$0xff]  ;;  %v447_v13 = vpack.c.bf16 %v141_v10, %v139_v8  ;;  %v143_v15 = vld [vmem:[#allocation2 + $0x20] sm:$0xff] }
  0x2a   :  { %444 = vmatpush3.bf16.msra.mxu0 %v443_v4  ;;  %v449_v14 = vpack.c.bf16 %v146_v12, %v144_v11  ;;  %v145_v16 = vld [vmem:[#allocation2 + $0x30] sm:$0xff]  ;;  %v148_v17 = vld [vmem:[#allocation2 + $0x48] sm:$0xff]  ;;  %v150_v18 = vld [vmem:[#allocation2 + $0x58] sm:$0xff] }
  0x2b   :  { %446 = vmatprep.subr.bf16.mxu1 %v445_v9  ;;  %v451_v19 = vpack.c.bf16 %v145_v16, %v143_v15  ;;  %v453_v20 = vpack.c.bf16 %v150_v18, %v148_v17  ;;  %v147_v21 = vld [vmem:[#allocation2 + $0x40] sm:$0xff]  ;;  %v149_v22 = vld [vmem:[#allocation2 + $0x50] sm:$0xff]  ;;  %v152_v23 = vld [vmem:[#allocation2 + $0x68] sm:$0xff] }
  0x2c   :  { %448 = vmatpush1.bf16.msra.mxu1 %v447_v13  ;;  %v154_v24 = vld [vmem:[#allocation2 + $0x78] sm:$0xff]  ;;  %v455_v25 = vpack.c.bf16 %v149_v22, %v147_v21  ;;  %v151_v27 = vld [vmem:[#allocation2 + $0x60] sm:$0xff]  ;;  %v153_v28 = vld [vmem:[#allocation2 + $0x70] sm:$0xff] }
  0x2d   :  { %440 = vmatmul.mubr.msk.f32.vlgmr.msra.gmra.mrb[0].mxu0 %vm64_vm1, %v54_v5  ;;  %450 = vmatprep.subr.bf16.mxu1 %v449_v14  ;;  %v457_v26 = vpack.c.bf16 %v154_v24, %v152_v23  ;;  %v156_v29 = vld [vmem:[#allocation2 + $0x88] sm:$0xff]  ;;  %v158_v30 = vld [vmem:[#allocation2 + $0x98] sm:$0xff]  ;;  %v459_v31 = vpack.c.bf16 %v153_v28, %v151_v27  ;;  %v155_v33 = vld [vmem:[#allocation2 + $0x80] sm:$0xff] }
  0x2e   :  { %v461_v32 = vpack.c.bf16 %v158_v30, %v156_v29  ;;  %v157_v34 = vld [vmem:[#allocation2 + $0x90] sm:$0xff]  ;;  %v160_v35 = vld [vmem:[#allocation2 + $0xa8] sm:$0xff]  ;;  %v162_v36 = vld [vmem:[#allocation2 + $0xb8] sm:$0xff] }
  0x2f   :  { %v463_v37 = vpack.c.bf16 %v157_v34, %v155_v33  ;;  %v465_v38 = vpack.c.bf16 %v162_v36, %v160_v35  ;;  %v159_v39 = vld [vmem:[#allocation2 + $0xa0] sm:$0xff]  ;;  %v161_v40 = vld [vmem:[#allocation2 + $0xb0] sm:$0xff]  ;;  %v164_v41 = vld [vmem:[#allocation2 + $0xc8] sm:$0xff] }
  0x30   :  { %452 = vmatpush1.bf16.msra.mxu1 %v451_v19  ;;  %v166_v42 = vld [vmem:[#allocation2 + $0xd8] sm:$0xff]  ;;  %v467_v43 = vpack.c.bf16 %v161_v40, %v159_v39  ;;  %v163_v45 = vld [vmem:[#allocation2 + $0xc0] sm:$0xff]  ;;  %v165_v46 = vld [vmem:[#allocation2 + $0xd0] sm:$0xff] }
  0x31   :  { %454 = vmatprep.subr.bf16.mxu1 %v453_v20  ;;  %v469_v44 = vpack.c.bf16 %v166_v42, %v164_v41  ;;  %v471_v47 = vpack.c.bf16 %v165_v46, %v163_v45  ;;  %v168_v48 = vld [vmem:[#allocation2 + $0xe8] sm:$0xff]  ;;  %v170_v49 = vld [vmem:[#allocation2 + $0xf8] sm:$0xff]  ;;  %v167_v51 = vld [vmem:[#allocation2 + $0xe0] sm:$0xff] }
  0x32   :  { %v473_v50 = vpack.c.bf16 %v170_v49, %v168_v48  ;;  %v169_v52 = vld [vmem:[#allocation2 + $0xf0] sm:$0xff]  ;;  %v272_v54 = vld [vmem:[#allocation4 + $0x80] sm:$0xff]  ;;  %v273_v55 = vld [vmem:[#allocation4 + $0x88] sm:$0xff] }
  0x33   :  { %v475_v53 = vpack.c.bf16 %v169_v52, %v167_v51  ;;  %v256_v56 = vld [vmem:[#allocation4] sm:$0xff]  ;;  %v477_v57 = vpack.c.bf16 %v273_v55, %v272_v54  ;;  %v257_v58 = vld [vmem:[#allocation4 + $0x8] sm:$0xff]  ;;  %v274_v59 = vld [vmem:[#allocation4 + $0x90] sm:$0xff] }
  0x34   :  { %456 = vmatpush1.bf16.msra.mxu1 %v455_v25  ;;  %v275_v60 = vld [vmem:[#allocation4 + $0x98] sm:$0xff]  ;;  %v479_v61 = vpack.c.bf16 %v257_v58, %v256_v56  ;;  %v258_v63 = vld [vmem:[#allocation4 + $0x10] sm:$0xff]  ;;  %v276_v1 = vld [vmem:[#allocation4 + $0xa0] sm:$0xff] }
  0x35   :  { %458 = vmatprep.subr.bf16.mxu1 %v457_v26  ;;  %v481_v62 = vpack.c.bf16 %v275_v60, %v274_v59  ;;  %v259_v0 = vld [vmem:[#allocation4 + $0x18] sm:$0xff]  ;;  %478 = vmatprep.subr.bf16.mxu0 %v477_v57  ;;  %v277_v2 = vld [vmem:[#allocation4 + $0xa8] sm:$0xff]  ;;  %v260_v5 = vld [vmem:[#allocation4 + $0x20] sm:$0xff] }
  0x36   :  { %480 = vmatpush3.bf16.msra.mxu0 %v479_v61  ;;  %v483_v3 = vpack.c.bf16 %v259_v0, %v258_v63  ;;  %v485_v4 = vpack.c.bf16 %v277_v2, %v276_v1  ;;  %v261_v6 = vld [vmem:[#allocation4 + $0x28] sm:$0xff]  ;;  %v278_v7 = vld [vmem:[#allocation4 + $0xb0] sm:$0xff]  ;;  %v279_v8 = vld [vmem:[#allocation4 + $0xb8] sm:$0xff] }
  0x37   :  { %482 = vmatprep.subr.bf16.mxu0 %v481_v62  ;;  %v487_v9 = vpack.c.bf16 %v261_v6, %v260_v5  ;;  %v489_v10 = vpack.c.bf16 %v279_v8, %v278_v7  ;;  %v262_v11 = vld [vmem:[#allocation4 + $0x30] sm:$0xff]  ;;  %v263_v12 = vld [vmem:[#allocation4 + $0x38] sm:$0xff]  ;;  %v280_v13 = vld [vmem:[#allocation4 + $0xc0] sm:$0xff] }
  0x38   :  { %460 = vmatpush1.bf16.msra.mxu1 %v459_v31  ;;  %v281_v14 = vld [vmem:[#allocation4 + $0xc8] sm:$0xff]  ;;  %v491_v15 = vpack.c.bf16 %v263_v12, %v262_v11  ;;  %v264_v17 = vld [vmem:[#allocation4 + $0x40] sm:$0xff]  ;;  %v282_v19 = vld [vmem:[#allocation4 + $0xd0] sm:$0xff] }
  0x39   :  { %462 = vmatprep.subr.bf16.mxu1 %v461_v32  ;;  %v493_v16 = vpack.c.bf16 %v281_v14, %v280_v13  ;;  %v265_v18 = vld [vmem:[#allocation4 + $0x48] sm:$0xff]  ;;  %v283_v20 = vld [vmem:[#allocation4 + $0xd8] sm:$0xff]  ;;  %v266_v23 = vld [vmem:[#allocation4 + $0x50] sm:$0xff] }
  0x3a   :  { %484 = vmatpush3.bf16.msra.mxu0 %v483_v3  ;;  %v495_v21 = vpack.c.bf16 %v265_v18, %v264_v17  ;;  %v497_v22 = vpack.c.bf16 %v283_v20, %v282_v19  ;;  %v267_v24 = vld [vmem:[#allocation4 + $0x58] sm:$0xff]  ;;  %v284_v25 = vld [vmem:[#allocation4 + $0xe0] sm:$0xff]  ;;  %v285_v26 = vld [vmem:[#allocation4 + $0xe8] sm:$0xff] }
  0x3b   :  { %486 = vmatprep.subr.bf16.mxu0 %v485_v4  ;;  %v499_v27 = vpack.c.bf16 %v267_v24, %v266_v23  ;;  %v501_v28 = vpack.c.bf16 %v285_v26, %v284_v25  ;;  %v394_v29 = vld [vmem:[%s664_s2] ss:$0 sm:$0xff]  ;;  %v268_v34 = vld [vmem:[#allocation4 + $0x60] sm:$0xff]  ;;  %v269_v35 = vld [vmem:[#allocation4 + $0x68] sm:$0xff] }
  0x3c   :  { %464 = vmatpush1.bf16.msra.mxu1 %v463_v37  ;;  %v503_v36 = vpack.c.bf16 %v269_v35, %v268_v34  ;;  %v286_v37 = vld [vmem:[#allocation4 + $0xf0] sm:$0xff]  ;;  %v271_v41 = vld [vmem:[#allocation4 + $0x78] sm:$0xff] }
  0x3d   :  { %466 = vmatprep.subr.bf16.mxu1 %v465_v38  ;;  %v287_v38 = vld [vmem:[#allocation4 + $0xf8] sm:$0xff]  ;;  %v270_v40 = vld [vmem:[#allocation4 + $0x70] sm:$0xff] }
  0x3e   :  { %488 = vmatpush3.bf16.msra.mxu0 %v487_v9  ;;  %v505_v39 = vpack.c.bf16 %v287_v38, %v286_v37  ;;  %v507_v42 = vpack.c.bf16 %v271_v41, %v270_v40  ;;  %v171_v46 = vld [vmem:[%s666_s4] sm:$0x3] }
  0x3f   :  { %490 = vmatprep.subr.bf16.mxu0 %v489_v10  ;;  %v396_v59 = vld [vmem:[%s668_s6] ss:$0 sm:$0xff] }
  0x40   :  { %468 = vmatpush1.bf16.msra.mxu1 %v467_v43  ;;  %v173_v43 = vlaneseq }
  0x41   :  { %470 = vmatprep.subr.bf16.mxu1 %v469_v44 }
  0x42   :  { %492 = vmatpush3.bf16.msra.mxu0 %v491_v15  ;;  %v174_v44 = vshrl.u32 %v173_v43, 7  ;;  %v368_v56 = vand.u32 127, %v173_v43 }
  0x43   :  { %494 = vmatprep.subr.bf16.mxu0 %v493_v16 }
  0x44   :  { %472 = vmatpush1.bf16.msra.mxu1 %v471_v47  ;;  %v175_v45 = vsub.s32 0, %v174_v44  ;;  %v179_v47 = vsub.s32 1, %v174_v44  ;;  %vm369_vm2 = vcmp.lt.s32.totalorder %v174_v44, 4  ;;  %vm370_vm3 = vcmp.ge.s32.totalorder %v368_v56, 4 }
  0x45   :  { %474 = vmatprep.subr.bf16.mxu1 %v473_v50  ;;  %vm371_vm4 = vmand %vm369_vm2, %vm370_vm3  ;;  %vm372_vm5 = vcmp.lt.s32.totalorder %v368_v56, 8 }
  0x46   :  { %496 = vmatpush3.bf16.msra.mxu0 %v495_v21  ;;  %v176_v48 = vrot.slane %v171_v46, %v175_v45  ;;  %v180_v49 = vrot.slane %v171_v46, %v179_v47  ;;  %vm373_vm6 = vmand %vm371_vm4, %vm372_vm5 }
  0x47   :  { %498 = vmatprep.subr.bf16.mxu0 %v497_v22 }
  0x48   :  { %476 = vmatpush1.bf16.msra.mxu1 %v475_v53 }
  0x4a   :  { %500 = vmatpush3.bf16.msra.mxu0 %v499_v27 }
  0x4b   :  { %502 = vmatprep.subr.bf16.mxu0 %v501_v28 }
  0x4e   :  { %504 = vmatpush3.bf16.msra.mxu0 %v503_v36 }
  0x4f   :  { %506 = vmatprep.subr.bf16.mxu0 %v505_v39 }
  0x52   :  { %508 = vmatpush3.bf16.msra.mxu0 %v507_v42 }
 0x100   :  { %v134_v30 = vpop.f32.mrb[0].mxu0 }
 0x101   :  { %v135_v31 = vadd.f32 %v394_v29, %v134_v30  ;;  %v441_v32 = vpop.f32.mrb[1].mxu0 }
 0x103   :  { %v138_v33 = vmax.f32 %v135_v31, 0.0 }
 0x105   :  { %248 = vmatmul.mubr.f32.vlgmr.msra.gmra.mrb[0].mxu1 %v138_v33 }
 0x1d8   :  { %v249_v50 = vpop.f32.mrb[0].mxu1 }
 0x1d9   :  { %v250_v51 = vadd.f32 %v249_v50, %v176_v48  ;;  %v251_v52 = vpop.f32.mrb[1].mxu1 }
 0x1da   :  { %v252_v53 = vadd.f32 %v251_v52, %v180_v49 }
 0x1db   :  { %v254_v55 = vmax.f32 %v250_v51, 0.0 }
 0x1dc   :  { %v255_v54 = vmax.f32 %v252_v53, 0.0 }
 0x1de   :  { %359 = vmatprep.mubr.f32.mxu0 %v255_v54 }
 0x1df   :  { %360 = vmatmul.mubr.f32.vlgmr.msra.gmra.mrb[2].mxu0 %v254_v55 }
 0x2b2   :  { %v432_v57 = vpop.f32.mrb[2].mxu0 }
 0x2b3   :  { %v433_v58 = vpop.f32.mrb[3].mxu0 }
 0x2b4   :  { %v434_v60 = vadd.f32 %v433_v58, %v432_v57 }
 0x2b6   :  { %v362_v61 = vadd.f32 %v434_v60, %v396_v59 }
 0x2b8   :  { %v374_v62 = vsel %vm373_vm6, %v362_v61, 0.0 }
 0x2b9   :  { %375 = vadd.xlane.f32.xlu0 %v374_v62 }
 0x346   :  { %v376_v63 = vpop.xlane.xlu0 %375 }
 0x347   :  { %v377_v0 = vrot.slane %v376_v63, 4 }
 0x349   :  { %v378_v1 = vadd.f32 %v377_v0, %v376_v63 }
 0x34b   :  { %v379_v2 = vrot.slane %v378_v1, 2 }
 0x34d   :  { %v380_v3 = vadd.f32 %v379_v2, %v378_v1 }
 0x34f   :  { %v381_v4 = vrot.slane %v380_v3, 1 }
 0x351   :  { %v382_v5 = vadd.f32 %v381_v4, %v380_v3 }
 0x353   :  { %509 = vpush %v382_v5 }
 0x384   :  { %s510_s12 = spop %509 }
 0x385   :  { %s384_s13 = smul.f32 0.0625, %s510_s12 }
 0x387   :  { %v385_v6 = vstv %s384_s13 }
 0x388   :  { %v386_v7 = vsub.f32 %v362_v61, %v385_v6 }
 0x38a   :  { %387 = vst [vmem:[%s669_s7] sm:$0xff] %v386_v7 }
 0x38b   :  { %392 = vsyncpa [#allocation3], 1 }
 0x38c   :  { %393 = vsyncpa [#allocation5], 1 }

</bundles_post_ra>
